<compile_context>
chip_gen: v7x
topology: tpu7x:2x2x1
jax: 0.10.0
libtpu: 0.0.40
codegen_flags: <defaults>
</compile_context>

<pallas_src>
import jax
import jax.numpy as jnp
from jax.experimental import pallas as pl
from jax.experimental.pallas import tpu as pltpu


# --------------------------------------------------------------------------------------
# Pass 1: dense projections + gate + lane-dense per-node stats slab (row-tiled, parallel)
# --------------------------------------------------------------------------------------
def separator_dense_kernel(g_ref, hnode_ref,
                           w_gnn_ref, b_gnn_ref,
                           w_gate_ref, b_gate_ref,
                           w_nn_ref, b_nn_ref,
                           h_out_ref, c_out_ref, stats_ref):
    # rationale_gnn_node: x = relu(g @ W_gnn + b_gnn)                       (MXU + VPU)
    x = jnp.dot(g_ref[...], w_gnn_ref[...], preferred_element_type=jnp.float32)
    x = jnp.maximum(x + b_gnn_ref[...], 0.0)

    # gate_nn: a [tm,HID]@[HID,1] matmul would waste a full MXU pass for one output lane,
    # so compute it as a VPU multiply + lane reduce (XLU) instead.
    gate_logit = jnp.sum(x * w_gate_ref[...], axis=-1, keepdims=True) + b_gate_ref[...]
    gate = jax.nn.sigmoid(gate_logit)                                       # [tm, 1]  (EUP)

    # self.nn: h_node projection                                            (MXU)
    hn = jnp.dot(hnode_ref[...], w_nn_ref[...],
                 preferred_element_type=jnp.float32) + b_nn_ref[...]

    h_out_ref[...] = gate * hn
    c_out_ref[...] = (1.0 - gate) * hn

    # Lane-dense per-node stats slab (128 wide, unmasked stores):
    #   col0 = gate, col1 = 1-gate, col2 = 1 (all_nodes), col3 = (gate > 0), rest = 0
    tm = stats_ref.shape[0]
    col = jax.lax.broadcasted_iota(jnp.int32, (tm, 128), 1)
    gate_b = jnp.broadcast_to(gate, (tm, 128))
    nz_b = (gate_b > 0.0).astype(jnp.float32)
    ones = jnp.ones_like(gate_b)
    zeros = jnp.zeros_like(gate_b)
    stats_ref[...] = jnp.where(col == 0, gate_b,
                     jnp.where(col == 1, 1.0 - gate_b,
                     jnp.where(col == 2, ones,
                     jnp.where(col == 3, nz_b, zeros))))


# --------------------------------------------------------------------------------------
# Pass 2: tiled scatter_add over segments (resident [N_pad, 128] accumulator, "arbitrary")
# --------------------------------------------------------------------------------------
def separator_scatter_kernel(hidx_ref, stats_ref, acc_ref):
    @pl.when(pl.program_id(0) == 0)
    def _():
        acc_ref[...] = jnp.zeros_like(acc_ref)

    n_seg = acc_ref.shape[0]
    tm = hidx_ref.shape[1]
    # one-hot[s, j] = (h_idx[j] == s); padded nodes carry h_idx = -1 and never match.
    seg = jax.lax.broadcasted_iota(jnp.int32, (n_seg, tm), 0)               # [N_pad, tm]
    onehot = (seg == hidx_ref[...]).astype(jnp.float32)
    acc_ref[...] += jnp.dot(onehot, stats_ref[...],
                            preferred_element_type=jnp.float32)             # [N_pad, 128]


# --------------------------------------------------------------------------------------
# Wrapper: padding (lane alignment), BlockSpecs, two pallas_calls, un-padding
# --------------------------------------------------------------------------------------
def _round_up(x, m):
    return (x + m - 1) // m * m


def separator_forward(g, h_idx, h_node, params, *, row_tile=256):
    """g: [N, F_in] node inputs to the rationale GNN; h_idx: [N] int32 node->graph id;
    h_node: [N, D_in] node embeddings.
    Returns (h_out, c_out, r_node_num, env_node_num, non_zero_node_ratio)."""
    w_gnn, b_gnn, w_gate, b_gate, w_nn, b_nn = params
    f32 = jnp.float32

    n, f_in = g.shape
    d_in = h_node.shape[1]
    hid = w_gnn.shape[1]
    d_out = w_nn.shape[1]

    # ---- pad feature dims to multiples of 128 and rows to a multiple of the row tile ----
    f_p = _round_up(f_in, 128)
    h_p = _round_up(hid, 128)
    di_p = _round_up(d_in, 128)
    do_p = _round_up(d_out, 128)

    n8 = _round_up(n, 8)
    if n8 <= row_tile:
        tm = n8                             # single tile, block == full row extent
    else:
        tm = _round_up(row_tile, 128)       # multiple of 128 -> all BlockSpecs stay legal
    n_pad = _round_up(n, tm)
    grid = (n_pad // tm,)

    g_p = jnp.zeros((n_pad, f_p), f32).at[:n, :f_in].set(g.astype(f32))
    hn_p = jnp.zeros((n_pad, di_p), f32).at[:n, :d_in].set(h_node.astype(f32))
    w_gnn_p = jnp.zeros((f_p, h_p), f32).at[:f_in, :hid].set(jnp.asarray(w_gnn, f32))
    b_gnn_p = jnp.zeros((1, h_p), f32).at[:, :hid].set(jnp.asarray(b_gnn, f32).reshape(1, hid))
    w_gate_p = jnp.zeros((1, h_p), f32).at[:, :hid].set(jnp.asarray(w_gate, f32).reshape(1, hid))
    b_gate_p = jnp.asarray(b_gate, f32).reshape(1, 1)
    w_nn_p = jnp.zeros((di_p, do_p), f32).at[:d_in, :d_out].set(jnp.asarray(w_nn, f32))
    b_nn_p = jnp.zeros((1, do_p), f32).at[:, :d_out].set(jnp.asarray(b_nn, f32).reshape(1, d_out))

    # padded rows get segment id -1 so they never contribute to the scatter
    hidx_p = jnp.full((1, n_pad), -1, jnp.int32).at[0, :n].set(h_idx.astype(jnp.int32))

    def row_spec(cols):
        return pl.BlockSpec((tm, cols), lambda i: (i, 0))

    def full_spec(shape):
        return pl.BlockSpec(shape, lambda i: (0, 0))

    cparams_parallel = pltpu.CompilerParams(
        dimension_semantics=("parallel",),
        vmem_limit_bytes=32 * 1024 * 1024)
    cparams_arbitrary = pltpu.CompilerParams(
        dimension_semantics=("arbitrary",),
        vmem_limit_bytes=32 * 1024 * 1024)

    # -------- pass 1: dense, row-tiled, megacore-parallel --------
    h_out_p, c_out_p, stats = pl.pallas_call(
        separator_dense_kernel,
        out_shape=(
            jax.ShapeDtypeStruct((n_pad, do_p), f32),   # h_out (padded)
            jax.ShapeDtypeStruct((n_pad, do_p), f32),   # c_out (padded)
            jax.ShapeDtypeStruct((n_pad, 128), f32),    # lane-dense per-node stats slab
        ),
        grid=grid,
        in_specs=[
            row_spec(f_p),               # g tile
            row_spec(di_p),              # h_node tile
            full_spec((f_p, h_p)),       # W_gnn
            full_spec((1, h_p)),         # b_gnn
            full_spec((1, h_p)),         # W_gate (as row vector)
            full_spec((1, 1)),           # b_gate
            full_spec((di_p, do_p)),     # W_nn
            full_spec((1, do_p)),        # b_nn
        ],
        out_specs=(row_spec(do_p), row_spec(do_p), row_spec(128)),
        compiler_params=cparams_parallel,
    )(g_p, hn_p, w_gnn_p, b_gnn_p, w_gate_p, b_gate_p, w_nn_p, b_nn_p)

    # -------- pass 2: tiled scatter_add into a resident accumulator --------
    acc = pl.pallas_call(
        separator_scatter_kernel,
        out_shape=jax.ShapeDtypeStruct((n_pad, 128), f32),
        grid=grid,
        in_specs=[
            pl.BlockSpec((1, tm), lambda i: (0, i)),     # h_idx tile
            pl.BlockSpec((tm, 128), lambda i: (i, 0)),   # stats tile
        ],
        out_specs=pl.BlockSpec((n_pad, 128), lambda i: (0, 0)),  # resident accumulator
        compiler_params=cparams_arbitrary,
    )(hidx_p, stats)

    # -------- un-pad / unpack --------
    h_out = h_out_p[:n, :d_out]
    c_out = c_out_p[:n, :d_out]
    r_node_num = acc[:n, 0:1] + 1e-8
    env_node_num = acc[:n, 1:2] + 1e-8
    # non_zero_node_ratio: NaN (0/0) for empty segments, matching the PyTorch behaviour.
    non_zero_node_ratio = acc[:n, 3:4] / acc[:n, 2:3]
    return h_out, c_out, r_node_num, env_node_num, non_zero_node_ratio


if __name__ == "__main__":
    # Small synthetic shapes consistent with the module's forward.
    N, F_IN, HID, D = 16, 8, 32, 16
    NUM_GRAPHS = 3

    key = jax.random.PRNGKey(0)
    ks = jax.random.split(key, 9)

    g = jax.random.normal(ks[0], (N, F_IN), jnp.float32)
    h_node = jax.random.normal(ks[1], (N, D), jnp.float32)
    h_idx = jnp.sort(jax.random.randint(ks[2], (N,), 0, NUM_GRAPHS)).astype(jnp.int32)

    # Deterministic parameter init (synthetic, not a checkpoint).
    w_gnn = 0.1 * jax.random.normal(ks[3], (F_IN, HID), jnp.float32)
    b_gnn = 0.1 * jax.random.normal(ks[4], (1, HID), jnp.float32)
    w_gate = 0.1 * jax.random.normal(ks[5], (HID, 1), jnp.float32)
    b_gate = 0.1 * jax.random.normal(ks[6], (1, 1), jnp.float32)
    w_nn = 0.1 * jax.random.normal(ks[7], (D, D), jnp.float32)
    b_nn = 0.1 * jax.random.normal(ks[8], (1, D), jnp.float32)
    params = (w_gnn, b_gnn, w_gate, b_gate, w_nn, b_nn)

    outs = separator_forward(g, h_idx, h_node, params)
    outs = jax.block_until_ready(outs)
    h_out, c_out, r_num, env_num, ratio = outs

    # Pure-JAX reference check.
    x_ref = jax.nn.relu(g @ w_gnn + b_gnn)
    gate_ref = jax.nn.sigmoid(x_ref @ w_gate + b_gate)
    hn_ref = h_node @ w_nn + b_nn
    h_out_ref = gate_ref * hn_ref
    c_out_ref = (1.0 - gate_ref) * hn_ref
    r_ref = jax.ops.segment_sum(gate_ref, h_idx, num_segments=N) + 1e-8
    e_ref = jax.ops.segment_sum(1.0 - gate_ref, h_idx, num_segments=N) + 1e-8
    nz_ref = jax.ops.segment_sum((gate_ref > 0).astype(jnp.float32), h_idx, num_segments=N)
    all_ref = jax.ops.segment_sum(jnp.ones_like(gate_ref), h_idx, num_segments=N)
    ratio_ref = nz_ref / all_ref

    ok = (
        bool(jnp.allclose(h_out, h_out_ref, atol=1e-5))
        and bool(jnp.allclose(c_out, c_out_ref, atol=1e-5))
        and bool(jnp.allclose(r_num, r_ref, atol=1e-5))
        and bool(jnp.allclose(env_num, e_ref, atol=1e-5))
        and bool(jnp.allclose(ratio, ratio_ref, atol=1e-5, equal_nan=True))
    )
    assert ok, "Pallas separator kernel mismatch vs JAX reference"
    print("KERNEL_OK")
</pallas_src>

<mosaic_0001>
module attributes {stable_mosaic.version = 11 : i64} {
  func.func @separator_dense_kernel(%arg0: i32, %arg1: memref<16x128xf32, #tpu.memory_space<vmem>>, %arg2: memref<16x128xf32, #tpu.memory_space<vmem>>, %arg3: memref<128x128xf32, #tpu.memory_space<vmem>>, %arg4: memref<1x128xf32, #tpu.memory_space<vmem>>, %arg5: memref<1x128xf32, #tpu.memory_space<vmem>>, %arg6: memref<1x1xf32, #tpu.memory_space<vmem>>, %arg7: memref<128x128xf32, #tpu.memory_space<vmem>>, %arg8: memref<1x128xf32, #tpu.memory_space<vmem>>, %arg9: memref<16x128xf32, #tpu.memory_space<vmem>>, %arg10: memref<16x128xf32, #tpu.memory_space<vmem>>, %arg11: memref<16x128xf32, #tpu.memory_space<vmem>>) attributes {dimension_semantics = [#tpu.dimension_semantics<parallel>], iteration_bounds = array<i64: 1>, scalar_prefetch = 0 : i64, scratch_operands = 0 : i64, tpu.core_type = #tpu.core_type<tc>, window_params = [{transform_indices = @transform_0, window_bounds = array<i64: 16, 128>}, {transform_indices = @transform_1, window_bounds = array<i64: 16, 128>}, {pipeline_mode = #tpu.pipeline_mode<synchronous>, transform_indices = @transform_2, window_bounds = array<i64: 128, 128>}, {pipeline_mode = #tpu.pipeline_mode<synchronous>, transform_indices = @transform_3, window_bounds = array<i64: 1, 128>}, {pipeline_mode = #tpu.pipeline_mode<synchronous>, transform_indices = @transform_4, window_bounds = array<i64: 1, 128>}, {pipeline_mode = #tpu.pipeline_mode<synchronous>, transform_indices = @transform_5, window_bounds = array<i64: 1, 1>}, {pipeline_mode = #tpu.pipeline_mode<synchronous>, transform_indices = @transform_6, window_bounds = array<i64: 128, 128>}, {pipeline_mode = #tpu.pipeline_mode<synchronous>, transform_indices = @transform_7, window_bounds = array<i64: 1, 128>}, {transform_indices = @transform_8, window_bounds = array<i64: 16, 128>}, {transform_indices = @transform_9, window_bounds = array<i64: 16, 128>}, {transform_indices = @transform_10, window_bounds = array<i64: 16, 128>}]} {
    %c0 = arith.constant 0 : index
    %c0_0 = arith.constant 0 : index
    %0 = vector.load %arg1[%c0, %c0_0] : memref<16x128xf32, #tpu.memory_space<vmem>>, vector<16x128xf32>
    %c0_1 = arith.constant 0 : index
    %c0_2 = arith.constant 0 : index
    %1 = vector.load %arg3[%c0_1, %c0_2] : memref<128x128xf32, #tpu.memory_space<vmem>>, vector<128x128xf32>
    %cst = arith.constant dense<0.000000e+00> : vector<16x128xf32>
    %2 = tpu.matmul %0, %1, %cst {dimension_numbers = #tpu.dot_dimension_numbers<[1], [0], [0], [1], [0, 0, 1, 1], [], []>} : vector<16x128xf32>, vector<128x128xf32>, vector<16x128xf32> -> vector<16x128xf32>
    %c0_3 = arith.constant 0 : index
    %c0_4 = arith.constant 0 : index
    %3 = vector.load %arg4[%c0_3, %c0_4] : memref<1x128xf32, #tpu.memory_space<vmem>>, vector<1x128xf32>
    %4 = vector.broadcast %3 : vector<1x128xf32> to vector<16x128xf32>
    %5 = arith.addf %2, %4 : vector<16x128xf32>
    %cst_5 = arith.constant 0.000000e+00 : f32
    %6 = vector.broadcast %cst_5 : f32 to vector<16x128xf32>
    %7 = arith.maximumf %5, %6 : vector<16x128xf32>
    %c0_6 = arith.constant 0 : index
    %c0_7 = arith.constant 0 : index
    %8 = vector.load %arg5[%c0_6, %c0_7] : memref<1x128xf32, #tpu.memory_space<vmem>>, vector<1x128xf32>
    %9 = vector.broadcast %8 : vector<1x128xf32> to vector<16x128xf32>
    %10 = arith.mulf %7, %9 : vector<16x128xf32>
    %cst_8 = arith.constant dense<0.000000e+00> : vector<16xf32>
    %11 = vector.multi_reduction <add>, %10, %cst_8 [1] : vector<16x128xf32> to vector<16xf32>
    %12 = vector.shape_cast %11 : vector<16xf32> to vector<16x1xf32>
    %c0_9 = arith.constant 0 : index
    %c0_10 = arith.constant 0 : index
    %13 = vector.load %arg6[%c0_9, %c0_10] : memref<1x1xf32, #tpu.memory_space<vmem>>, vector<1x1xf32>
    %14 = vector.broadcast %13 : vector<1x1xf32> to vector<16x1xf32>
    %15 = arith.addf %12, %14 : vector<16x1xf32>
    %16 = arith.negf %15 : vector<16x1xf32>
    %17 = math.exp %16 : vector<16x1xf32>
    %cst_11 = arith.constant 1.000000e+00 : f32
    %18 = vector.broadcast %cst_11 : f32 to vector<16x1xf32>
    %19 = arith.addf %18, %17 : vector<16x1xf32>
    %20 = arith.divf %18, %19 : vector<16x1xf32>
    %c0_12 = arith.constant 0 : index
    %c0_13 = arith.constant 0 : index
    %21 = vector.load %arg2[%c0_12, %c0_13] : memref<16x128xf32, #tpu.memory_space<vmem>>, vector<16x128xf32>
    %c0_14 = arith.constant 0 : index
    %c0_15 = arith.constant 0 : index
    %22 = vector.load %arg7[%c0_14, %c0_15] : memref<128x128xf32, #tpu.memory_space<vmem>>, vector<128x128xf32>
    %cst_16 = arith.constant dense<0.000000e+00> : vector<16x128xf32>
    %23 = tpu.matmul %21, %22, %cst_16 {dimension_numbers = #tpu.dot_dimension_numbers<[1], [0], [0], [1], [0, 0, 1, 1], [], []>} : vector<16x128xf32>, vector<128x128xf32>, vector<16x128xf32> -> vector<16x128xf32>
    %c0_17 = arith.constant 0 : index
    %c0_18 = arith.constant 0 : index
    %24 = vector.load %arg8[%c0_17, %c0_18] : memref<1x128xf32, #tpu.memory_space<vmem>>, vector<1x128xf32>
    %25 = vector.broadcast %24 : vector<1x128xf32> to vector<16x128xf32>
    %26 = arith.addf %23, %25 : vector<16x128xf32>
    %27 = vector.broadcast %20 : vector<16x1xf32> to vector<16x128xf32>
    %28 = arith.mulf %27, %26 : vector<16x128xf32>
    %c0_19 = arith.constant 0 : index
    %c0_20 = arith.constant 0 : index
    %29 = vector.load %arg9[%c0_19, %c0_20] : memref<16x128xf32, #tpu.memory_space<vmem>>, vector<16x128xf32>
    tpu.vector_store %arg9[%c0_19, %c0_20], %28 {strides = array<i32>} : memref<16x128xf32, #tpu.memory_space<vmem>>, vector<16x128xf32>,
    %cst_21 = arith.constant 1.000000e+00 : f32
    %30 = vector.broadcast %cst_21 : f32 to vector<16x1xf32>
    %31 = arith.subf %30, %20 : vector<16x1xf32>
    %32 = vector.broadcast %31 : vector<16x1xf32> to vector<16x128xf32>
    %33 = arith.mulf %32, %26 : vector<16x128xf32>
    %c0_22 = arith.constant 0 : index
    %c0_23 = arith.constant 0 : index
    %34 = vector.load %arg10[%c0_22, %c0_23] : memref<16x128xf32, #tpu.memory_space<vmem>>, vector<16x128xf32>
    tpu.vector_store %arg10[%c0_22, %c0_23], %33 {strides = array<i32>} : memref<16x128xf32, #tpu.memory_space<vmem>>, vector<16x128xf32>,
    %35 = tpu.iota {dimensions = array<i32: 1>} : vector<16x128xi32>
    %36 = vector.shape_cast %20 : vector<16x1xf32> to vector<16x1xf32>
    %37 = vector.broadcast %36 : vector<16x1xf32> to vector<16x128xf32>
    %cst_24 = arith.constant 0.000000e+00 : f32
    %38 = vector.broadcast %cst_24 : f32 to vector<16x128xf32>
    %39 = arith.cmpf ogt, %37, %38 : vector<16x128xf32>
    %40 = arith.extui %39 : vector<16x128xi1> to vector<16x128xi32>
    %41 = arith.sitofp %40 : vector<16x128xi32> to vector<16x128xf32>
    %cst_25 = arith.constant 1.000000e+00 : f32
    %42 = vector.broadcast %cst_25 : f32 to vector<16x128xf32>
    %cst_26 = arith.constant 0.000000e+00 : f32
    %43 = vector.broadcast %cst_26 : f32 to vector<16x128xf32>
    %c0_i32 = arith.constant 0 : i32
    %44 = vector.broadcast %c0_i32 : i32 to vector<16x128xi32>
    %45 = arith.cmpi eq, %35, %44 : vector<16x128xi32>
    %c1_i32 = arith.constant 1 : i32
    %46 = vector.broadcast %c1_i32 : i32 to vector<16x128xi32>
    %47 = arith.cmpi eq, %35, %46 : vector<16x128xi32>
    %cst_27 = arith.constant 1.000000e+00 : f32
    %48 = vector.broadcast %cst_27 : f32 to vector<16x128xf32>
    %49 = arith.subf %48, %37 : vector<16x128xf32>
    %c2_i32 = arith.constant 2 : i32
    %50 = vector.broadcast %c2_i32 : i32 to vector<16x128xi32>
    %51 = arith.cmpi eq, %35, %50 : vector<16x128xi32>
    %c3_i32 = arith.constant 3 : i32
    %52 = vector.broadcast %c3_i32 : i32 to vector<16x128xi32>
    %53 = arith.cmpi eq, %35, %52 : vector<16x128xi32>
    %54 = arith.select %53, %41, %43 : vector<16x128xi1>, vector<16x128xf32>
    %55 = arith.select %51, %42, %54 : vector<16x128xi1>, vector<16x128xf32>
    %56 = arith.select %47, %49, %55 : vector<16x128xi1>, vector<16x128xf32>
    %57 = arith.select %45, %37, %56 : vector<16x128xi1>, vector<16x128xf32>
    %c0_28 = arith.constant 0 : index
    %c0_29 = arith.constant 0 : index
    %58 = vector.load %arg11[%c0_28, %c0_29] : memref<16x128xf32, #tpu.memory_space<vmem>>, vector<16x128xf32>
    tpu.vector_store %arg11[%c0_28, %c0_29], %57 {strides = array<i32>} : memref<16x128xf32, #tpu.memory_space<vmem>>, vector<16x128xf32>,
    return
  }
  func.func @transform_0(%arg0: i32) -> (i32, i32) {
    %c0_i32 = arith.constant 0 : i32
    %c0_i32_0 = arith.constant 0 : i32
    return %arg0, %c0_i32 : i32, i32
  }
  func.func @transform_1(%arg0: i32) -> (i32, i32) {
    %c0_i32 = arith.constant 0 : i32
    %c0_i32_0 = arith.constant 0 : i32
    return %arg0, %c0_i32 : i32, i32
  }
  func.func @transform_2(%arg0: i32) -> (i32, i32) {
    %c0_i32 = arith.constant 0 : i32
    %c0_i32_0 = arith.constant 0 : i32
    %c0_i32_1 = arith.constant 0 : i32
    return %c0_i32, %c0_i32_0 : i32, i32
  }
  func.func @transform_3(%arg0: i32) -> (i32, i32) {
    %c0_i32 = arith.constant 0 : i32
    %c0_i32_0 = arith.constant 0 : i32
    %c0_i32_1 = arith.constant 0 : i32
    return %c0_i32, %c0_i32_0 : i32, i32
  }
  func.func @transform_4(%arg0: i32) -> (i32, i32) {
    %c0_i32 = arith.constant 0 : i32
    %c0_i32_0 = arith.constant 0 : i32
    %c0_i32_1 = arith.constant 0 : i32
    return %c0_i32, %c0_i32_0 : i32, i32
  }
  func.func @transform_5(%arg0: i32) -> (i32, i32) {
    %c0_i32 = arith.constant 0 : i32
    %c0_i32_0 = arith.constant 0 : i32
    %c0_i32_1 = arith.constant 0 : i32
    return %c0_i32, %c0_i32_0 : i32, i32
  }
  func.func @transform_6(%arg0: i32) -> (i32, i32) {
    %c0_i32 = arith.constant 0 : i32
    %c0_i32_0 = arith.constant 0 : i32
    %c0_i32_1 = arith.constant 0 : i32
    return %c0_i32, %c0_i32_0 : i32, i32
  }
  func.func @transform_7(%arg0: i32) -> (i32, i32) {
    %c0_i32 = arith.constant 0 : i32
    %c0_i32_0 = arith.constant 0 : i32
    %c0_i32_1 = arith.constant 0 : i32
    return %c0_i32, %c0_i32_0 : i32, i32
  }
  func.func @transform_8(%arg0: i32) -> (i32, i32) {
    %c0_i32 = arith.constant 0 : i32
    %c0_i32_0 = arith.constant 0 : i32
    return %arg0, %c0_i32 : i32, i32
  }
  func.func @transform_9(%arg0: i32) -> (i32, i32) {
    %c0_i32 = arith.constant 0 : i32
    %c0_i32_0 = arith.constant 0 : i32
    return %arg0, %c0_i32 : i32, i32
  }
  func.func @transform_10(%arg0: i32) -> (i32, i32) {
    %c0_i32 = arith.constant 0 : i32
    %c0_i32_0 = arith.constant 0 : i32
    return %arg0, %c0_i32 : i32, i32
  }
}

</mosaic_0001>

<bundles_post_ra>
// kernel: tpu_custom_call.1
= control target key start
LH: loop header
LB: loop body
LE: loop exit
PB: predicated region body
PF: predicated region fallthrough
CT: control target
= control target key end

     0   :  { %s1006_s0 = inlined_call_operand.hbm [shape: f32[16,128], index: 0, kind: input, shape index: {}]   ;;  %s1007_s1 = inlined_call_operand.hbm [shape: f32[16,128], index: 1, kind: input, shape index: {}]   ;;  %s1008_s2 = inlined_call_operand.hbm [shape: f32[128,128], index: 2, kind: input, shape index: {}]   ;;  %s1009_s3 = inlined_call_operand.vmem [shape: f32[1,128], index: 3, kind: input, shape index: {}]   ;;  %s1010_s4 = inlined_call_operand.vmem [shape: f32[1,128], index: 4, kind: input, shape index: {}]   ;;  %s1011_s5 = inlined_call_operand.<no memory space> [shape: f32[1,1], index: 5, kind: input, shape index: {}]   ;;  %s1012_s6 = inlined_call_operand.hbm [shape: f32[128,128], index: 6, kind: input, shape index: {}]   ;;  %s1013_s7 = inlined_call_operand.vmem [shape: f32[1,128], index: 7, kind: input, shape index: {}]   ;;  %s1014_s8 = inlined_call_operand.hbm [shape: f32[16,128], index: 8, kind: output, shape index: {0}]   ;;  %s1015_s9 = inlined_call_operand.hbm [shape: f32[16,128], index: 9, kind: output, shape index: {1}]   ;;  %s1016_s10 = inlined_call_operand.hbm [shape: f32[16,128], index: 10, kind: output, shape index: {2}]  }
   0x1   :  { %v16_v0 = vstv %s1011_s5 }
   0x2   :  { %17 = vst [vmem:[#allocation2] sm:$0x1] %v16_v0 }
   0x3   :  { %18 = vsyncpa [#allocation4], 0 }
   0x4   :  { %19 = vsyncpa [#allocation7], 0 }
   0x5   :  { %20 = vsyncpa [#allocation10], 0 }
   0x6   :  { %21 = vsyncpa [#allocation5], 0 }
   0x7   :  { %22 = vsyncpa [#allocation13], 0  ;;  %s794_s15 = smov [#allocation6]   ;;  %s795_s17 = smov [#allocation3]  }
   0x8   :  { %s40_s16 = sshll.u32 %s794_s15, 4  ;;  %s28_s18 = sshll.u32 %s795_s17, 4  ;;  %s41_s16 = int_to_ptr.vmem [resolvable:$true] %s40_s16  ;;  %s863_s18 = int_to_ptr.vmem [resolvable:$true] %s28_s18 }
   0x9   :  { %s630_s21 = scalar_lea.hbm %s1007_s1, 256 }
   0xa   :  { %p631_p0 = scmp.ne.s32.totalorder %s1007_s1, %s630_s21  ;;  %p634_p1 = scmp.lt.u32.totalorder %s630_s21, %s1007_s1 }
   0xc   :  { %p636_p2 = pnand %p634_p1, %p631_p0 }
   0xe   :  { %639 = shalt.err (!%p636_p2)
}
   0xf   :  { %s640_s25 = scalar_lea.vmem %s41_s16, 256  ;;  %p645_p4 = scmp.lt.s32.totalorder %s41_s16, %s41_s16 }
  0x10   :  { %p641_p3 = scmp.ne.s32.totalorder %s41_s16, %s640_s25  ;;  %p646_p5 = scmp.lt.s32.totalorder %s640_s25, %s640_s25 }
  0x12   :  { %p647_p6 = por %p646_p5, %p645_p4 }
  0x14   :  { %p648_p7 = pnand %p647_p6, %p641_p3 }
  0x16   :  { %651 = shalt.err (!%p648_p7)
}
  0x17   :  { %s796_s26 = smov 128   ;;  %s797_s27 = smov 8  }
  0x18   :  { %46 = dma.hbm_to_vmem [thread:$0]  %s1007_s1, 256, %s41_s16, [#allocation7], %s796_s26, %s796_s26, %s797_s27  }
  0x19   :  { %s652_s12 = scalar_lea.hbm %s1006_s0, 256 }
  0x1a   :  { %p653_p8 = scmp.ne.s32.totalorder %s1006_s0, %s652_s12  ;;  %p656_p9 = scmp.lt.u32.totalorder %s652_s12, %s1006_s0 }
  0x1c   :  { %p658_p10 = pnand %p656_p9, %p653_p8 }
  0x1e   :  { %661 = shalt.err (!%p658_p10)
}
  0x1f   :  { %s662_s19 = scalar_lea.vmem %s863_s18, 256  ;;  %p667_p12 = scmp.lt.s32.totalorder %s863_s18, %s863_s18 }
  0x20   :  { %p663_p11 = scmp.ne.s32.totalorder %s863_s18, %s662_s19  ;;  %p668_p13 = scmp.lt.s32.totalorder %s662_s19, %s662_s19 }
  0x22   :  { %p669_p0 = por %p668_p13, %p667_p12 }
  0x24   :  { %p670_p1 = pnand %p669_p0, %p663_p11 }
  0x26   :  { %673 = shalt.err (!%p670_p1)
}
  0x27   :  { %34 = dma.hbm_to_vmem [thread:$0]  %s1006_s0, 256, %s863_s18, [#allocation4], %s796_s26, %s796_s26, %s797_s27  }
  0x28   :  { %s798_s20 = smov [#allocation8]   ;;  %s799_s22 = smov [#allocation9]  }
  0x29   :  { %s52_s21 = sshll.u32 %s798_s20, 4  ;;  %s70_s23 = sshll.u32 %s799_s22, 4  ;;  %s53_s21 = int_to_ptr.vmem [resolvable:$true] %s52_s21  ;;  %s900_s23 = int_to_ptr.vmem [resolvable:$true] %s70_s23 }
  0x2a   :  { %s674_s25 = scalar_lea.hbm %s1008_s2, 2048 }
  0x2b   :  { %p675_p2 = scmp.ne.s32.totalorder %s1008_s2, %s674_s25  ;;  %p678_p3 = scmp.lt.u32.totalorder %s674_s25, %s1008_s2 }
  0x2d   :  { %p680_p4 = pnand %p678_p3, %p675_p2 }
  0x2f   :  { %683 = shalt.err (!%p680_p4)
}
  0x30   :  { %s684_s0 = scalar_lea.vmem %s53_s21, 2048  ;;  %p689_p6 = scmp.lt.s32.totalorder %s53_s21, %s53_s21 }
  0x31   :  { %p685_p5 = scmp.ne.s32.totalorder %s53_s21, %s684_s0  ;;  %p690_p7 = scmp.lt.s32.totalorder %s684_s0, %s684_s0 }
  0x33   :  { %p691_p8 = por %p690_p7, %p689_p6 }
  0x35   :  { %p692_p9 = pnand %p691_p8, %p685_p5 }
  0x37   :  { %695 = shalt.err (!%p692_p9)
}
  0x38   :  { %58 = dma.hbm_to_vmem [thread:$0]  %s1008_s2, 2048, %s53_s21, [#allocation7], %s796_s26, %s796_s26, %s797_s27  }
  0x39   :  { %s696_s15 = scalar_lea.hbm %s1012_s6, 2048 }
  0x3a   :  { %p697_p10 = scmp.ne.s32.totalorder %s1012_s6, %s696_s15  ;;  %p700_p11 = scmp.lt.u32.totalorder %s696_s15, %s1012_s6 }
  0x3c   :  { %p702_p12 = pnand %p700_p11, %p697_p10 }
  0x3e   :  { %705 = shalt.err (!%p702_p12)
}
  0x3f   :  { %s706_s20 = scalar_lea.vmem %s900_s23, 2048  ;;  %p711_p0 = scmp.lt.s32.totalorder %s900_s23, %s900_s23 }
  0x40   :  { %p707_p13 = scmp.ne.s32.totalorder %s900_s23, %s706_s20  ;;  %p712_p1 = scmp.lt.s32.totalorder %s706_s20, %s706_s20 }
  0x42   :  { %p713_p2 = por %p712_p1, %p711_p0 }
  0x44   :  { %p714_p3 = pnand %p713_p2, %p707_p13 }
  0x46   :  { %717 = shalt.err (!%p714_p3)
}
  0x47   :  { %76 = dma.hbm_to_vmem [thread:$0]  %s1012_s6, 2048, %s900_s23, [#allocation10], %s796_s26, %s796_s26, %s797_s27  }
  0x48   :  { %784 = dma.done.wait [#allocation4], 256  }
  0x49   :  { %785 = vsyncadd [#allocation4], 4294967040 }
  0x4a   :  { %786 = dma.done.wait [#allocation7], 2304  }
  0x4b   :  { %787 = vsyncadd [#allocation7], 4294964992 }
  0x4c   :  { %788 = dma.done.wait [#allocation10], 2048  }
  0x4d   :  { %789 = vsyncadd [#allocation10], 4294965248  ;;  %v93_v1 = vld [vmem:[#allocation8] sm:$0xff]  ;;  %v94_v2 = vld [vmem:[#allocation8 + $0x8] sm:$0xff]  ;;  %v800_v63 = vmov 0   ;;  %s802_s24 = smov [#allocation11]  }
  0x4e   :  { %v95_v3 = vld [vmem:[#allocation8 + $0x10] sm:$0xff]  ;;  %v545_v4 = vpack.c.bf16 %v94_v2, %v93_v1  ;;  %v96_v5 = vld [vmem:[#allocation8 + $0x18] sm:$0xff]  ;;  %v97_v7 = vld [vmem:[#allocation8 + $0x20] sm:$0xff]  ;;  %621 = vset.pattern.permute.xlu0 %v800_v63  ;;  %620 = vset.pattern.permute.xlu1 %v800_v63  ;;  %s386_s25 = sshll.u32 %s802_s24, 4  ;;  %s804_s29 = smov [#allocation14]   ;;  %s387_s25 = int_to_ptr.vmem [resolvable:$true] %s386_s25 }
  0x4f   :  { %v549_v6 = vpack.c.bf16 %v96_v5, %v95_v3  ;;  %v98_v8 = vld [vmem:[#allocation8 + $0x28] sm:$0xff]  ;;  %v91_v10 = vld [vmem:[#allocation3] sm:$0xff]  ;;  %v99_v11 = vld [vmem:[#allocation8 + $0x30] sm:$0xff]  ;;  %s410_s30 = sshll.u32 %s804_s29, 4  ;;  %s718_s11 = scalar_lea.vmem %s387_s25, 256  ;;  %s969_s30 = int_to_ptr.vmem [resolvable:$true] %s410_s30 }
  0x50   :  { %546 = vmatprep.subr.bf16.mxu0 %v545_v4  ;;  %v553_v9 = vpack.c.bf16 %v98_v8, %v97_v7  ;;  %v100_v12 = vld [vmem:[#allocation8 + $0x38] sm:$0xff]  ;;  %507 = vmatprep.mubr.f32.mxu0 %v91_v10  ;;  %v101_v14 = vld [vmem:[#allocation8 + $0x40] sm:$0xff]  ;;  %v102_v15 = vld [vmem:[#allocation8 + $0x48] sm:$0xff]  ;;  %p719_p4 = scmp.ne.s32.totalorder %s387_s25, %s718_s11  ;;  %p723_p5 = scmp.lt.s32.totalorder %s387_s25, %s387_s25 }
  0x51   :  { %548 = vmatpush3.bf16.msra.mxu0 %v545_v4  ;;  %v557_v13 = vpack.c.bf16 %v100_v12, %v99_v11  ;;  %v561_v16 = vpack.c.bf16 %v102_v15, %v101_v14  ;;  %v103_v17 = vld [vmem:[#allocation8 + $0x50] sm:$0xff]  ;;  %v104_v18 = vld [vmem:[#allocation8 + $0x58] sm:$0xff]  ;;  %v105_v20 = vld [vmem:[#allocation8 + $0x60] sm:$0xff]  ;;  %p724_p6 = scmp.lt.s32.totalorder %s718_s11, %s718_s11 }
  0x52   :  { %550 = vmatprep.subr.bf16.mxu0 %v549_v6  ;;  %v565_v19 = vpack.c.bf16 %v104_v18, %v103_v17  ;;  %v106_v21 = vld [vmem:[#allocation8 + $0x68] sm:$0xff]  ;;  %v107_v23 = vld [vmem:[#allocation8 + $0x70] sm:$0xff]  ;;  %v108_v24 = vld [vmem:[#allocation8 + $0x78] sm:$0xff]  ;;  %v357_v18 = vlaneseq }
  0x53   :  { %v569_v22 = vpack.c.bf16 %v106_v21, %v105_v20  ;;  %v573_v25 = vpack.c.bf16 %v108_v24, %v107_v23  ;;  %v92_v26 = vld [vmem:[#allocation3 + $0x8] sm:$0xff]  ;;  %v229_v27 = vld [vmem:[#allocation9] sm:$0xff]  ;;  %v231_v29 = vld [vmem:[#allocation9 + $0x10] sm:$0xff]  ;;  %p725_p7 = por %p724_p6, %p723_p5 }
  0x54   :  { %v230_v28 = vld [vmem:[#allocation9 + $0x8] sm:$0xff]  ;;  %v232_v31 = vld [vmem:[#allocation9 + $0x18] sm:$0xff]  ;;  %v233_v33 = vld [vmem:[#allocation9 + $0x20] sm:$0xff]  ;;  %v358_v20 = vand.u32 127, %v357_v18 }
  0x55   :  { %552 = vmatpush3.bf16.msra.mxu0 %v549_v6  ;;  %v577_v30 = vpack.c.bf16 %v230_v28, %v229_v27  ;;  %v581_v32 = vpack.c.bf16 %v232_v31, %v231_v29  ;;  %v234_v34 = vld [vmem:[#allocation9 + $0x28] sm:$0xff]  ;;  %v227_v36 = vld [vmem:[#allocation6] sm:$0xff]  ;;  %v236_v38 = vld [vmem:[#allocation9 + $0x38] sm:$0xff]  ;;  %p726_p8 = pnand %p725_p7, %p719_p4 }
  0x56   :  { %554 = vmatprep.subr.bf16.mxu0 %v553_v9  ;;  %v585_v35 = vpack.c.bf16 %v234_v34, %v233_v33  ;;  %v235_v37 = vld [vmem:[#allocation9 + $0x30] sm:$0xff]  ;;  %542 = vmatprep.mubr.f32.mxu1 %v227_v36  ;;  %v237_v40 = vld [vmem:[#allocation9 + $0x40] sm:$0xff]  ;;  %v238_v41 = vld [vmem:[#allocation9 + $0x48] sm:$0xff]  ;;  %vm370_vm0 = vcmp.eq.s32.totalorder %v358_v20, 3  ;;  %vm369_vm1 = vcmp.eq.s32.totalorder %v358_v20, 2  ;;  %vm366_vm3 = vcmp.eq.s32.totalorder %v358_v20, 1 }
  0x57   :  { %578 = vmatprep.subr.bf16.mxu1 %v577_v30  ;;  %v589_v39 = vpack.c.bf16 %v236_v38, %v235_v37  ;;  %v593_v42 = vpack.c.bf16 %v238_v41, %v237_v40  ;;  %v239_v43 = vld [vmem:[#allocation9 + $0x50] sm:$0xff]  ;;  %v240_v44 = vld [vmem:[#allocation9 + $0x58] sm:$0xff]  ;;  %v241_v46 = vld [vmem:[#allocation9 + $0x60] sm:$0xff]  ;;  %vm365_vm4 = vcmp.eq.s32.totalorder %v358_v20, 0 }
  0x58   :  { %580 = vmatpush3.bf16.msra.mxu1 %v577_v30  ;;  %v597_v45 = vpack.c.bf16 %v240_v44, %v239_v43  ;;  %v242_v47 = vld [vmem:[#allocation9 + $0x68] sm:$0xff]  ;;  %v243_v49 = vld [vmem:[#allocation9 + $0x70] sm:$0xff]  ;;  %v244_v50 = vld [vmem:[#allocation9 + $0x78] sm:$0xff] }
  0x59   :  { %556 = vmatpush3.bf16.msra.mxu0 %v553_v9  ;;  %582 = vmatprep.subr.bf16.mxu1 %v581_v32  ;;  %v601_v48 = vpack.c.bf16 %v242_v47, %v241_v46  ;;  %v605_v51 = vpack.c.bf16 %v244_v50, %v243_v49  ;;  %v228_v52 = vld [vmem:[#allocation6 + $0x8] sm:$0xff] }
  0x5a   :  { %558 = vmatprep.subr.bf16.mxu0 %v557_v13  ;;  %v431_v53 = vld [vmem:[%s1009_s3] ss:$0 sm:$0xff] }
  0x5b   :  { %v432_v58 = vld [vmem:[%s1010_s4] ss:$0 sm:$0xff] }
  0x5c   :  { %584 = vmatpush3.bf16.msra.mxu1 %v581_v32  ;;  %v433_v2 = vld [vmem:[#allocation2] ss:$0 sm:$0xff] }
  0x5d   :  { %560 = vmatpush3.bf16.msra.mxu0 %v557_v13  ;;  %586 = vmatprep.subr.bf16.mxu1 %v585_v35  ;;  %v436_v17 = vld [vmem:[%s1013_s7] ss:$0 sm:$0xff]  ;;  %s803_s7 = smov [#allocation12]  }
  0x5e   :  { %562 = vmatprep.subr.bf16.mxu0 %v561_v16  ;;  %s398_s28 = sshll.u32 %s803_s7, 4  ;;  %s399_s28 = int_to_ptr.vmem [resolvable:$true] %s398_s28 }
  0x60   :  { %588 = vmatpush3.bf16.msra.mxu1 %v585_v35 }
  0x61   :  { %564 = vmatpush3.bf16.msra.mxu0 %v561_v16  ;;  %590 = vmatprep.subr.bf16.mxu1 %v589_v39 }
  0x62   :  { %566 = vmatprep.subr.bf16.mxu0 %v565_v19 }
  0x64   :  { %592 = vmatpush3.bf16.msra.mxu1 %v589_v39 }
  0x65   :  { %568 = vmatpush3.bf16.msra.mxu0 %v565_v19  ;;  %594 = vmatprep.subr.bf16.mxu1 %v593_v42 }
  0x66   :  { %570 = vmatprep.subr.bf16.mxu0 %v569_v22 }
  0x68   :  { %596 = vmatpush3.bf16.msra.mxu1 %v593_v42 }
  0x69   :  { %572 = vmatpush3.bf16.msra.mxu0 %v569_v22  ;;  %598 = vmatprep.subr.bf16.mxu1 %v597_v45 }
  0x6a   :  { %574 = vmatprep.subr.bf16.mxu0 %v573_v25 }
  0x6c   :  { %600 = vmatpush3.bf16.msra.mxu1 %v597_v45 }
  0x6d   :  { %576 = vmatpush3.bf16.msra.mxu0 %v573_v25  ;;  %602 = vmatprep.subr.bf16.mxu1 %v601_v48 }
  0x70   :  { %508 = vmatmul.mubr.f32.vlgmr.msra.gmra.mrb[0].mxu0 %v92_v26  ;;  %604 = vmatpush3.bf16.msra.mxu1 %v601_v48  ;;  %v801_v26 = vmov 0.0  }
  0x71   :  { %606 = vmatprep.subr.bf16.mxu1 %v605_v51 }
  0x74   :  { %608 = vmatpush3.bf16.msra.mxu1 %v605_v51 }
  0x77   :  { %543 = vmatmul.mubr.f32.vlgmr.msra.gmra.mrb[0].mxu1 %v228_v52 }
 0x143   :  { %v509_v54 = vpop.f32.mrb[0].mxu0 }
 0x144   :  { %v182_v55 = vpop.f32.mrb[1].mxu0  ;;  %v188_v56 = vadd.f32 %v509_v54, %v431_v53 }
 0x145   :  { %v183_v57 = vadd.f32 %v431_v53, %v182_v55 }
 0x146   :  { %v192_v60 = vmax.f32 %v188_v56, 0.0 }
 0x147   :  { %v191_v59 = vmax.f32 %v183_v57, 0.0 }
 0x148   :  { %v201_v62 = vmul.f32 %v432_v58, %v192_v60 }
 0x149   :  { %v200_v61 = vmul.f32 %v432_v58, %v191_v59 }
 0x14a   :  { %v544_v0 = vpop.f32.mrb[0].mxu1 }
 0x14b   :  { %202 = vadd.xlane.f32.xlu0 %v200_v61  ;;  %v318_v1 = vpop.f32.mrb[1].mxu1  ;;  %v324_v21 = vadd.f32 %v544_v0, %v436_v17 }
 0x14c   :  { %v319_v19 = vadd.f32 %v436_v17, %v318_v1 }
 0x14f   :  { %204 = vadd.xlane.f32.xlu0 %v201_v62 }
 0x1d8   :  { %v203_v3 = vpop.xlane.xlu0 %202 }
 0x1d9   :  { %v213_v4 = vadd.f32 %v433_v2, %v203_v3 }
 0x1db   :  { %v434_v5 = vmul.f32 -1.442695, %v213_v4 }
 0x1dc   :  { %v205_v6 = vpop.xlane.xlu0 %204 }
 0x1dd   :  { %622 = vpow2.f32 %v434_v5  ;;  %v214_v7 = vadd.f32 %v433_v2, %v205_v6 }
 0x1df   :  { %v435_v8 = vmul.f32 -1.442695, %v214_v7 }
 0x1e1   :  { %624 = vpow2.f32 %v435_v8 }
 0x1e7   :  { %v623_v9 = vpop.eup %622 }
 0x1e8   :  { %v221_v10 = vadd.f32 1.0, %v623_v9 }
 0x1ea   :  { %626 = vrcp.f32 %v221_v10 }
 0x1eb   :  { %v625_v11 = vpop.eup %624 }
 0x1ec   :  { %v222_v12 = vadd.f32 1.0, %v625_v11 }
 0x1ee   :  { %628 = vrcp.f32 %v222_v12 }
 0x1f4   :  { %v627_v13 = vpop.eup %626 }
 0x1f5   :  { %v341_v14 = vsub.f32 1.0, %v627_v13 }
 0x1f7   :  { %345 = vperm.xlu0 %621, %v341_v14  }
 0x1f8   :  { %v629_v15 = vpop.eup %628 }
 0x1f9   :  { %334 = vperm.xlu1 %620, %v629_v15   ;;  %v342_v16 = vsub.f32 1.0, %v629_v15 }
 0x1fd   :  { %329 = vperm.xlu1 %620, %v627_v13  }
 0x201   :  { %350 = vperm.xlu1 %620, %v342_v16  }
 0x276   :  { %v346_v22 = vpop.permute.xlu0 %345 }
 0x277   :  { %v353_v23 = vmul.f32 %v346_v22, %v319_v19 }
 0x278   :  { %v335_v24 = vpop.permute.xlu1 %334 }
 0x279   :  { %355 = vst [vmem:[#allocation12] sm:$0xff] %v353_v23  ;;  %vm360_vm2 = vcmp.gt.f32.partialorder %v335_v24, 0.0  ;;  %v338_v25 = vmul.f32 %v335_v24, %v324_v21  ;;  %v368_v28 = vsub.f32 1.0, %v335_v24 }
 0x27a   :  { %v438_v27 = vsel %vm360_vm2, 1.0, %v801_v26 }
 0x27b   :  { %v372_v29 = vsel %vm370_vm0, %v438_v27, 0.0  ;;  %340 = vst [vmem:[#allocation11 + $0x8] sm:$0xff] %v338_v25 }
 0x27c   :  { %v374_v30 = vsel %vm369_vm1, 1.0, %v372_v29  ;;  %v330_v31 = vpop.permute.xlu1 %329 }
 0x27d   :  { %v376_v32 = vsel %vm366_vm3, %v368_v28, %v374_v30  ;;  %vm359_vm5 = vcmp.gt.f32.partialorder %v330_v31, 0.0  ;;  %v337_v33 = vmul.f32 %v330_v31, %v319_v19  ;;  %v367_v36 = vsub.f32 1.0, %v330_v31 }
 0x27e   :  { %v378_v34 = vsel %vm365_vm4, %v335_v24, %v376_v32  ;;  %v437_v35 = vsel %vm359_vm5, 1.0, %v801_v26 }
 0x27f   :  { %380 = vst [vmem:[#allocation14 + $0x8] sm:$0xff] %v378_v34  ;;  %v371_v37 = vsel %vm370_vm0, %v437_v35, 0.0  ;;  %339 = vst [vmem:[#allocation11] sm:$0xff] %v337_v33 }
 0x280   :  { %v373_v38 = vsel %vm369_vm1, 1.0, %v371_v37  ;;  %v351_v39 = vpop.permute.xlu1 %350 }
 0x281   :  { %729 = shalt.err (!%p726_p8)
}
 0x282   :  { %s730_s12 = scalar_lea.hbm %s1014_s8, 256 }
 0x283   :  { %p731_p9 = scmp.ne.s32.totalorder %s1014_s8, %s730_s12  ;;  %p734_p10 = scmp.lt.u32.totalorder %s730_s12, %s1014_s8 }
 0x285   :  { %p736_p11 = pnand %p734_p10, %p731_p9 }
 0x287   :  { %739 = shalt.err (!%p736_p11)
}
 0x288   :  { %392 = dma.vmem_to_hbm [thread:$0]  %s387_s25, 256, %s1014_s8, [#allocation5], %s796_s26, %s796_s26, %s797_s27   ;;  %v375_v40 = vsel %vm366_vm3, %v367_v36, %v373_v38  ;;  %v354_v41 = vmul.f32 %v351_v39, %v324_v21 }
 0x289   :  { %v377_v42 = vsel %vm365_vm4, %v330_v31, %v375_v40  ;;  %s740_s16 = scalar_lea.vmem %s399_s28, 256  ;;  %p745_p13 = scmp.lt.s32.totalorder %s399_s28, %s399_s28 }
 0x28a   :  { %379 = vst [vmem:[#allocation14] sm:$0xff] %v377_v42  ;;  %356 = vst [vmem:[#allocation12 + $0x8] sm:$0xff] %v354_v41  ;;  %p741_p12 = scmp.ne.s32.totalorder %s399_s28, %s740_s16  ;;  %p746_p0 = scmp.lt.s32.totalorder %s740_s16, %s740_s16 }
 0x28c   :  { %p747_p1 = por %p746_p0, %p745_p13 }
 0x28e   :  { %p748_p2 = pnand %p747_p1, %p741_p12 }
 0x290   :  { %751 = shalt.err (!%p748_p2)
}
 0x291   :  { %s752_s8 = scalar_lea.hbm %s1015_s9, 256 }
 0x292   :  { %p753_p3 = scmp.ne.s32.totalorder %s1015_s9, %s752_s8  ;;  %p756_p4 = scmp.lt.u32.totalorder %s752_s8, %s1015_s9 }
 0x294   :  { %p758_p5 = pnand %p756_p4, %p753_p3 }
 0x296   :  { %761 = shalt.err (!%p758_p5)
}
 0x297   :  { %404 = dma.vmem_to_hbm [thread:$0]  %s399_s28, 256, %s1015_s9, [#allocation13], %s796_s26, %s796_s26, %s797_s27  }
 0x298   :  { %s762_s4 = scalar_lea.vmem %s969_s30, 256  ;;  %p767_p7 = scmp.lt.s32.totalorder %s969_s30, %s969_s30 }
 0x299   :  { %p763_p6 = scmp.ne.s32.totalorder %s969_s30, %s762_s4  ;;  %p768_p8 = scmp.lt.s32.totalorder %s762_s4, %s762_s4 }
 0x29b   :  { %p769_p9 = por %p768_p8, %p767_p7 }
 0x29d   :  { %p770_p10 = pnand %p769_p9, %p763_p6 }
 0x29f   :  { %773 = shalt.err (!%p770_p10)
}
 0x2a0   :  { %s774_s7 = scalar_lea.hbm %s1016_s10, 256 }
 0x2a1   :  { %p775_p11 = scmp.ne.s32.totalorder %s1016_s10, %s774_s7  ;;  %p778_p12 = scmp.lt.u32.totalorder %s774_s7, %s1016_s10 }
 0x2a3   :  { %p780_p13 = pnand %p778_p12, %p775_p11 }
 0x2a5   :  { %783 = shalt.err (!%p780_p13)
}
 0x2a6   :  { %416 = dma.vmem_to_hbm [thread:$0]  %s969_s30, 256, %s1016_s10, [#allocation13], %s796_s26, %s796_s26, %s797_s27  }
 0x2a7   :  { %790 = dma.done.wait [#allocation5], 256  }
 0x2a8   :  { %791 = vsyncadd [#allocation5], 4294967040 }
 0x2a9   :  { %792 = dma.done.wait [#allocation13], 512  }
 0x2aa   :  { %793 = vsyncadd [#allocation13], 4294966784 }
 0x2ab   :  { %426 = vsyncpa [#allocation4], 1 }
 0x2ac   :  { %427 = vsyncpa [#allocation7], 1 }
 0x2ad   :  { %428 = vsyncpa [#allocation10], 1 }
 0x2ae   :  { %429 = vsyncpa [#allocation5], 1 }
 0x2af   :  { %430 = vsyncpa [#allocation13], 1 }

</bundles_post_ra>
